<compile_context>
chip_gen: v6e
topology: v6e:2x2x1
jax: 0.10.0
libtpu: 0.0.40
codegen_flags: <defaults>
</compile_context>

<pallas_src>
import jax
import jax.numpy as jnp
from jax.experimental import pallas as pl
from jax.experimental.pallas import tpu as pltpu


def _round_up(x, m):
    return (x + m - 1) // m * m


def _vmem_budget():
    """(logits_block_byte_budget, vmem_limit_bytes), generation-aware."""
    vmem = None
    try:
        info = pltpu.get_tpu_info()
        for name in ("vmem_capacity_bytes", "vmem_bytes", "vmem_size_bytes"):
            vmem = getattr(info, name, None)
            if vmem:
                break
    except Exception:
        vmem = None
    if vmem is None:
        vmem = 64 * 1024 * 1024  # conservative: assume v7x-class (64 MiB / TC)
    if vmem >= 100 * 1024 * 1024:
        # v5e / v6e: 128 MiB VMEM per TensorCore.
        return 12 * 1024 * 1024, 96 * 1024 * 1024
    # v7x (64 MiB per TC) or unknown: keep 2x double-buffered input block
    # plus f32/exp temporaries comfortably under ~48 MiB.
    return 6 * 1024 * 1024, 48 * 1024 * 1024


def _ce_kernel(logits_ref, labels_ref, loss_ref):
    """Per-row cross-entropy: loss_i = logsumexp(x_i) - x_i[label_i]."""
    x = logits_ref[...]                                       # (tile_n, C), input dtype
    lbl = labels_ref[...]                                     # (tile_n, 1) int32

    # Numerically stable logsumexp; the row-max stays in the input dtype
    # (cheap on bf16-capable VPUs), exp/accumulation runs in f32.
    m = jnp.max(x, axis=-1, keepdims=True)                    # (tile_n, 1)
    z = x.astype(jnp.float32) - m.astype(jnp.float32)         # (tile_n, C) f32
    sum_e = jnp.sum(jnp.exp(z), axis=-1, keepdims=True)       # (tile_n, 1)

    # Fused label pick: logits[label] - m, via iota mask (no dense one-hot).
    col = jax.lax.broadcasted_iota(jnp.int32, z.shape, 1)     # (tile_n, C)
    picked_z = jnp.sum(jnp.where(col == lbl, z, 0.0),
                       axis=-1, keepdims=True)                # (tile_n, 1)

    loss_ref[...] = jnp.log(sum_e) - picked_z                 # (tile_n, 1)


def ce_loss(logits, code_logits, labels, onehot=True, tile_n=None):
    """CELoss.forward for m_type='ce', multiclass=False (the default config).

    `code_logits` is accepted (to match the PyTorch signature) but unused on
    this path, exactly as in the reference module.

    Preconditions: label indices must lie in [0, C); N > 0 for a finite mean.
    """
    del code_logits  # unused by the 'ce' path
    N, C = logits.shape
    if N == 0:
        # torch F.cross_entropy(mean) over an empty batch is NaN.
        return jnp.float32(float("nan"))

    if onehot:
        labels = jnp.argmax(labels, axis=1)  # matches torch: labels.argmax(1)
    labels2d = labels.astype(jnp.int32).reshape(N, 1)

    # Batch tile: a multiple of 8 rows, sized against the generation-aware
    # per-block byte budget (double-buffered by the BlockSpec pipeline).
    block_budget, vmem_limit = _vmem_budget()
    itemsize = jnp.dtype(logits.dtype).itemsize
    if tile_n is None:
        bytes_per_row = max(1, C * itemsize)
        tile_n = (block_budget // bytes_per_row) // 8 * 8
    tile_n = max(8, min(tile_n // 8 * 8, _round_up(N, 8)))
    num_tiles = -(-N // tile_n)  # cdiv; last tile may be ragged (no pad copy)
    n_out = num_tiles * tile_n

    cost = pl.CostEstimate(
        flops=5 * N * C,                 # sub, exp-adjacent adds, cmp/select, sums
        transcendentals=N * C,           # exp
        bytes_accessed=N * C * itemsize + N * 4 + n_out * 4,
    )

    per_row = pl.pallas_call(
        _ce_kernel,
        out_shape=jax.ShapeDtypeStruct((n_out, 1), jnp.float32),
        grid=(num_tiles,),
        in_specs=[
            pl.BlockSpec((tile_n, C), lambda i: (i, 0)),
            pl.BlockSpec((tile_n, 1), lambda i: (i, 0)),
        ],
        out_specs=pl.BlockSpec((tile_n, 1), lambda i: (i, 0)),
        compiler_params=pltpu.CompilerParams(
            dimension_semantics=("parallel",),   # independent row tiles
            vmem_limit_bytes=vmem_limit,
        ),
        cost_estimate=cost,
    )(logits, labels2d)

    # Rows >= N (ragged last block) hold unspecified values; slice them away
    # and take the mean over the GLOBAL batch size.
    return jnp.sum(per_row[:N, 0]) / N


def _ce_loss_ref(logits, labels_onehot):
    # pure-JAX reference (== torch F.cross_entropy(logits, labels.argmax(1)))
    labels = jnp.argmax(labels_onehot, axis=1)
    logp = jax.nn.log_softmax(logits.astype(jnp.float32), axis=-1)
    return -jnp.mean(jnp.take_along_axis(logp, labels[:, None], axis=1)[:, 0])


if __name__ == "__main__":
    key = jax.random.PRNGKey(0)
    k1, k2, k3, k4, k5 = jax.random.split(key, 5)

    # Small shapes consistent with the module: (batch, n_classes) logits,
    # (batch, n_bits) hash code logits, one-hot labels.
    N, C, H = 8, 16, 32
    logits = jax.random.normal(k1, (N, C), dtype=jnp.float32)
    label_idx = jax.random.randint(k2, (N,), 0, C)
    labels_onehot = jax.nn.one_hot(label_idx, C, dtype=jnp.float32)
    code_logits = jax.random.normal(k3, (N, H), dtype=jnp.float32)  # unused by 'ce'

    loss = ce_loss(logits, code_logits, labels_onehot)
    loss = jax.block_until_ready(loss)
    ref = _ce_loss_ref(logits, labels_onehot)
    assert jnp.allclose(loss, ref, rtol=1e-5, atol=1e-5), (loss, ref)

    # Second check: exercises a multi-tile parallel grid and a ragged last
    # input block (N=50 with tile_n=16 -> 4 grid steps, last tile 2/16 valid).
    N2, C2 = 50, 256
    logits2 = jax.random.normal(k4, (N2, C2), dtype=jnp.float32)
    label_idx2 = jax.random.randint(k5, (N2,), 0, C2)
    labels_onehot2 = jax.nn.one_hot(label_idx2, C2, dtype=jnp.float32)

    loss2 = ce_loss(logits2, None, labels_onehot2, tile_n=16)
    loss2 = jax.block_until_ready(loss2)
    ref2 = _ce_loss_ref(logits2, labels_onehot2)
    assert jnp.allclose(loss2, ref2, rtol=1e-5, atol=1e-5), (loss2, ref2)

    print("KERNEL_OK")
</pallas_src>

<mosaic_0001>
module attributes {stable_mosaic.version = 11 : i64} {
  func.func @_ce_kernel(%arg0: i32, %arg1: memref<8x16xf32, #tpu.memory_space<vmem>>, %arg2: memref<8x1xi32, #tpu.memory_space<vmem>>, %arg3: memref<8x1xf32, #tpu.memory_space<vmem>>) attributes {dimension_semantics = [#tpu.dimension_semantics<parallel>], iteration_bounds = array<i64: 1>, scalar_prefetch = 0 : i64, scratch_operands = 0 : i64, tpu.core_type = #tpu.core_type<tc>, window_params = [{transform_indices = @transform_0, window_bounds = array<i64: 8, 16>}, {transform_indices = @transform_1, window_bounds = array<i64: 8, 1>}, {transform_indices = @transform_2, window_bounds = array<i64: 8, 1>}]} {
    %c0 = arith.constant 0 : index
    %c0_0 = arith.constant 0 : index
    %0 = vector.load %arg1[%c0, %c0_0] : memref<8x16xf32, #tpu.memory_space<vmem>>, vector<8x16xf32>
    %c0_1 = arith.constant 0 : index
    %c0_2 = arith.constant 0 : index
    %1 = vector.load %arg2[%c0_1, %c0_2] : memref<8x1xi32, #tpu.memory_space<vmem>>, vector<8x1xi32>
    %cst = arith.constant dense<0xFF800000> : vector<8xf32>
    %2 = vector.multi_reduction <maximumf>, %0, %cst [1] : vector<8x16xf32> to vector<8xf32>
    %3 = vector.shape_cast %2 : vector<8xf32> to vector<8x1xf32>
    %4 = vector.broadcast %3 : vector<8x1xf32> to vector<8x16xf32>
    %5 = arith.subf %0, %4 : vector<8x16xf32>
    %6 = math.exp %5 : vector<8x16xf32>
    %cst_3 = arith.constant dense<0.000000e+00> : vector<8xf32>
    %7 = vector.multi_reduction <add>, %6, %cst_3 [1] : vector<8x16xf32> to vector<8xf32>
    %8 = vector.shape_cast %7 : vector<8xf32> to vector<8x1xf32>
    %9 = tpu.iota {dimensions = array<i32: 1>} : vector<8x16xi32>
    %10 = vector.broadcast %1 : vector<8x1xi32> to vector<8x16xi32>
    %11 = arith.cmpi eq, %9, %10 : vector<8x16xi32>
    %cst_4 = arith.constant 0.000000e+00 : f32
    %12 = vector.broadcast %cst_4 : f32 to vector<8x16xf32>
    %13 = arith.select %11, %5, %12 : vector<8x16xi1>, vector<8x16xf32>
    %cst_5 = arith.constant dense<0.000000e+00> : vector<8xf32>
    %14 = vector.multi_reduction <add>, %13, %cst_5 [1] : vector<8x16xf32> to vector<8xf32>
    %15 = vector.shape_cast %14 : vector<8xf32> to vector<8x1xf32>
    %16 = math.log %8 : vector<8x1xf32>
    %17 = arith.subf %16, %15 : vector<8x1xf32>
    %c0_6 = arith.constant 0 : index
    %c0_7 = arith.constant 0 : index
    %18 = vector.load %arg3[%c0_6, %c0_7] : memref<8x1xf32, #tpu.memory_space<vmem>>, vector<8x1xf32>
    tpu.vector_store %arg3[%c0_6, %c0_7], %17 {strides = array<i32>} : memref<8x1xf32, #tpu.memory_space<vmem>>, vector<8x1xf32>,
    return
  }
  func.func @transform_0(%arg0: i32) -> (i32, i32) {
    %c0_i32 = arith.constant 0 : i32
    %c0_i32_0 = arith.constant 0 : i32
    return %arg0, %c0_i32 : i32, i32
  }
  func.func @transform_1(%arg0: i32) -> (i32, i32) {
    %c0_i32 = arith.constant 0 : i32
    %c0_i32_0 = arith.constant 0 : i32
    return %arg0, %c0_i32 : i32, i32
  }
  func.func @transform_2(%arg0: i32) -> (i32, i32) {
    %c0_i32 = arith.constant 0 : i32
    %c0_i32_0 = arith.constant 0 : i32
    return %arg0, %c0_i32 : i32, i32
  }
}

</mosaic_0001>

<bundles_post_ra>
// kernel: tpu_custom_call.1
= control target key start
LH: loop header
LB: loop body
LE: loop exit
PB: predicated region body
PF: predicated region fallthrough
CT: control target
= control target key end

     0   :  { %vm13_vm0 = vcmask 130048   ;;  %v48_v1 = vmov 0   ;;  %v23_v7 = vlaneseq  ;;  %vm36_vm2 = vcmask 7168   ;;  %s76_s0 = inlined_call_operand.vmem [shape: f32[8,16], index: 0, kind: input, shape index: {}]   ;;  %s77_s1 = inlined_call_operand.vmem [shape: s32[8,1], index: 1, kind: input, shape index: {}]   ;;  %s78_s2 = inlined_call_operand.vmem [shape: f32[8,1], index: 2, kind: output, shape index: {}]  }
   0x1   :  { %v11_v0 = vld [vmem:[%s76_s0] sm:$0xff]  ;;  %43 = vset.pattern.permute.xlu0 %v48_v1 }
   0x2   :  { %v14_v2 = vsel %vm13_vm0, %v11_v0, -inf  ;;  %v12_v3 = vld [vmem:[%s77_s1] sm:$0xff]  ;;  %v24_v8 = vand.u32 127, %v23_v7 }
   0x3   :  { %15 = vmax.xlane.f32.xlu0 %v14_v2 }
  0x19   :  { %26 = vperm.xlu0 %43, %v12_v3  }
  0x8c   :  { %v16_v4 = vpop.xlane.xlu0 %15 }
  0x8d   :  { %v17_v5 = vsub.f32 %v11_v0, %v16_v4 }
  0x8f   :  { %v18_v6 = vmul.f32 1.442695, %v17_v5 }
  0x91   :  { %44 = vpow2.f32 %v18_v6 }
  0x94   :  { %v27_v9 = vpop.permute.xlu0 %26 }
  0x95   :  { %vm28_vm1 = vcmp.eq.s32.totalorder %v24_v8, %v27_v9 }
  0x96   :  { %v29_v12 = vsel %vm28_vm1, %v17_v5, 0.0 }
  0x97   :  { %v30_v13 = vsel %vm13_vm0, %v29_v12, 0.0 }
  0x9e   :  { %v45_v10 = vpop.eup %44 }
  0x9f   :  { %v20_v11 = vsel %vm13_vm0, %v45_v10, 0.0 }
  0xa0   :  { %21 = vadd.xlane.f32.xlu1 %v20_v11 }
  0xa4   :  { %31 = vadd.xlane.f32.xlu1 %v30_v13 }
 0x129   :  { %v22_v14 = vpop.xlane.xlu1 %21 }
 0x12a   :  { %46 = vlog2.f32 %v22_v14 }
 0x12d   :  { %v32_v17 = vpop.xlane.xlu1 %31 }
 0x137   :  { %v47_v15 = vpop.eup %46 }
 0x138   :  { %v34_v16 = vmul.f32 0.6931472, %v47_v15 }
 0x13a   :  { %v35_v18 = vsub.f32 %v34_v16, %v32_v17 }
 0x13c   :  { %37 = vst.msk [vmem:[%s78_s2] sm:$0xff] %vm36_vm2, %v35_v18 }

</bundles_post_ra>
